<compile_context>
chip_gen: v7x
topology: tpu7x:2x2x1
jax: 0.10.0
libtpu: 0.0.40
codegen_flags: <defaults>
</compile_context>

<pallas_src>
import functools

import jax
import jax.numpy as jnp
from jax.experimental import pallas as pl
from jax.experimental.pallas import tpu as pltpu

LANE = 128          # lane width; output class dim is padded to this
NEG_BIG = -1e30     # padded-class bias -> exp underflows to 0 in log_softmax


# --------------------------------------------------------------------------- #
# Packed parameter slab layout (one (rows, 128) f32 array holding W1,b1,...,b3)
# --------------------------------------------------------------------------- #
def _param_layout(in_c, hid_c):
    r_w1 = 0
    r_b1 = r_w1 + in_c
    r_w2 = r_b1 + 1
    r_b2 = r_w2 + hid_c
    r_w3 = r_b2 + 1
    r_b3 = r_w3 + hid_c
    rows = r_b3 + 1
    rows_padded = ((rows + 7) // 8) * 8          # sublane-align (cosmetic)
    return r_w1, r_b1, r_w2, r_b2, r_w3, r_b3, rows_padded


def pack_inputs(ahat, x, params):
    """One-time preprocessing -- call at init, NOT per forward.

    * casts Ahat / X to bf16 MXU operands
    * zero-pads W3 / -1e30-pads b3 to 128 classes (lane-dense output)
    * packs the six weight/bias tensors into a single (rows, 128) f32 slab
    """
    (w1, b1, w2, b2, w3, b3) = params
    in_c, hid_c = w1.shape
    out_c = w3.shape[1]
    r_w1, r_b1, r_w2, r_b2, r_w3, r_b3, rows = _param_layout(in_c, hid_c)

    slab = jnp.zeros((rows, LANE), jnp.float32)
    slab = slab.at[r_w1:r_w1 + in_c, :hid_c].set(w1)
    slab = slab.at[r_b1, :hid_c].set(b1.reshape(-1))
    slab = slab.at[r_w2:r_w2 + hid_c, :hid_c].set(w2)
    slab = slab.at[r_b2, :hid_c].set(b2.reshape(-1))
    slab = slab.at[r_w3:r_w3 + hid_c, :out_c].set(w3)
    slab = slab.at[r_b3, :].set(
        jnp.concatenate(
            [b3.reshape(-1), jnp.full((LANE - out_c,), NEG_BIG, jnp.float32)]))

    return ahat.astype(jnp.bfloat16), x.astype(jnp.bfloat16), slab


# --------------------------------------------------------------------------- #
# Fused kernel: 3x GraphConv + ReLU + log_softmax, one VMEM block, no grid
# --------------------------------------------------------------------------- #
def _make_kernel(in_c, hid_c):
    r_w1, r_b1, r_w2, r_b2, r_w3, r_b3, _ = _param_layout(in_c, hid_c)

    def gcn_kernel(ahat_ref, x_ref, p_ref, out_ref):
        ahat = ahat_ref[...]                     # bf16 (N, N)
        x = x_ref[...]                           # bf16 (N, IN_C)

        # Static views into the packed f32 parameter slab.
        w1 = p_ref[r_w1:r_w1 + in_c, :hid_c].astype(jnp.bfloat16)
        b1 = p_ref[r_b1:r_b1 + 1, :hid_c]                       # f32
        w2 = p_ref[r_w2:r_w2 + hid_c, :hid_c].astype(jnp.bfloat16)
        b2 = p_ref[r_b2:r_b2 + 1, :hid_c]                       # f32
        w3 = p_ref[r_w3:r_w3 + hid_c, :].astype(jnp.bfloat16)   # (HID, 128)
        b3 = p_ref[r_b3:r_b3 + 1, :]                            # f32, padded -1e30

        def bf16(v):
            return v.astype(jnp.bfloat16)

        # Layer 1 (in_feats < out_feats): aggregate first, then transform.
        agg1 = jnp.dot(ahat, x, preferred_element_type=jnp.float32)
        h1 = jnp.dot(bf16(agg1), w1, preferred_element_type=jnp.float32) + b1
        h1 = jnp.maximum(h1, 0.0)                                # ReLU in f32

        # Layer 2 (hid == hid): transform first, then aggregate.
        hw2 = jnp.dot(bf16(h1), w2, preferred_element_type=jnp.float32)
        h2 = jnp.dot(ahat, bf16(hw2), preferred_element_type=jnp.float32) + b2
        h2 = jnp.maximum(h2, 0.0)

        # Layer 3: transform first (classes lane-padded to 128), then aggregate.
        hw3 = jnp.dot(bf16(h2), w3, preferred_element_type=jnp.float32)
        h3 = jnp.dot(ahat, bf16(hw3), preferred_element_type=jnp.float32) + b3

        # log_softmax over the 128-lane class axis in f32. Padded classes carry
        # -1e30 logits, so full-lane max / sum equal the real-class reductions.
        m = jnp.max(h3, axis=1, keepdims=True)
        z = h3 - m
        lse = jnp.log(jnp.sum(jnp.exp(z), axis=1, keepdims=True))
        out_ref[...] = z - lse                   # lane-dense (N, 128) unmasked store

    return gcn_kernel


@functools.partial(jax.jit, static_argnames=("hid_c",))
def dgl_net_forward_padded(ahat_bf, x_bf, param_slab, *, hid_c):
    """Hot path: a single pallas_call on pre-packed inputs.

    Returns the padded (N, 128) log-prob slab; real classes are columns [:out_c].
    """
    n, in_c = x_bf.shape
    vmem = pl.BlockSpec(memory_space=pltpu.MemorySpace.VMEM)
    return pl.pallas_call(
        _make_kernel(in_c, hid_c),
        out_shape=jax.ShapeDtypeStruct((n, LANE), jnp.float32),
        in_specs=[vmem, vmem, vmem],
        out_specs=vmem,
    )(ahat_bf, x_bf, param_slab)


# --------------------------------------------------------------------------- #
# Test scaffolding
# --------------------------------------------------------------------------- #
def build_normalized_adjacency(key, n):
    """Random undirected graph with self-loops; Ahat = D^{-1/2} A D^{-1/2}."""
    p = jax.random.uniform(key, (n, n))
    a = (p + p.T > 1.0).astype(jnp.float32)
    a = jnp.minimum(a + jnp.eye(n, dtype=jnp.float32), 1.0)
    deg = jnp.sum(a, axis=1)
    d_inv_sqrt = 1.0 / jnp.sqrt(deg)
    return a * d_inv_sqrt[:, None] * d_inv_sqrt[None, :]


def init_params(key, in_c, hid_c, out_c):
    ks = jax.random.split(key, 6)

    def glorot(k, fan_in, fan_out):
        scale = jnp.sqrt(6.0 / (fan_in + fan_out))
        return jax.random.uniform(k, (fan_in, fan_out), jnp.float32, -scale, scale)

    w1 = glorot(ks[0], in_c, hid_c)
    b1 = jnp.zeros((1, hid_c), jnp.float32)
    w2 = glorot(ks[1], hid_c, hid_c)
    b2 = jnp.zeros((1, hid_c), jnp.float32)
    w3 = glorot(ks[2], hid_c, out_c)
    b3 = jnp.zeros((1, out_c), jnp.float32)
    return (w1, b1, w2, b2, w3, b3)


def reference_forward_f32(ahat, x, params):
    """Exact f32 reference matching the original PyTorch module semantics."""
    (w1, b1, w2, b2, w3, b3) = params
    h = jnp.maximum(ahat @ (x @ w1) + b1, 0.0)
    h = jnp.maximum(ahat @ (h @ w2) + b2, 0.0)
    h = ahat @ (h @ w3) + b3
    return jax.nn.log_softmax(h, axis=1)


def reference_forward_bf16(ahat, x, params):
    """Reference with the same bf16 operand casts / matmul order as the kernel."""
    (w1, b1, w2, b2, w3, b3) = params

    def dot(a, b):
        return jnp.dot(a.astype(jnp.bfloat16), b.astype(jnp.bfloat16),
                       preferred_element_type=jnp.float32)

    h1 = jnp.maximum(dot(dot(ahat, x), w1) + b1, 0.0)   # aggregate-then-transform
    h2 = jnp.maximum(dot(ahat, dot(h1, w2)) + b2, 0.0)
    h3 = dot(ahat, dot(h2, w3)) + b3
    return jax.nn.log_softmax(h3, axis=1)


if __name__ == "__main__":
    N, IN_C, HID_C, OUT_C = 8, 16, 32, 8

    key = jax.random.PRNGKey(0)
    k_graph, k_feat, k_param = jax.random.split(key, 3)

    ahat = build_normalized_adjacency(k_graph, N)
    features = jax.random.normal(k_feat, (N, IN_C), jnp.float32)
    params = init_params(k_param, IN_C, HID_C, OUT_C)

    # One-time preprocessing (init): casts, class padding, param packing.
    ahat_bf, x_bf, param_slab = pack_inputs(ahat, features, params)
    ahat_bf, x_bf, param_slab = jax.block_until_ready((ahat_bf, x_bf, param_slab))

    # Hot path: single pallas_call, padded (N, 128) output.
    out_padded = dgl_net_forward_padded(ahat_bf, x_bf, param_slab, hid_c=HID_C)
    out_padded = jax.block_until_ready(out_padded)
    assert out_padded.shape == (N, LANE)

    # Slice to real classes only for validation (not part of the hot path).
    out = out_padded[:, :OUT_C]

    ref_bf16 = reference_forward_bf16(ahat, features, params)
    ref_f32 = reference_forward_f32(ahat, features, params)
    assert jnp.allclose(out, ref_bf16, atol=2e-3), "mismatch vs. bf16-matched reference"
    assert jnp.allclose(out, ref_f32, atol=1e-1), "mismatch vs. f32 reference"

    print("KERNEL_OK")
</pallas_src>

<mosaic_0001>
module attributes {stable_mosaic.version = 11 : i64} {
  func.func @gcn_kernel(%arg0: memref<8x8xbf16, #tpu.memory_space<vmem>>, %arg1: memref<8x16xbf16, #tpu.memory_space<vmem>>, %arg2: memref<88x128xf32, #tpu.memory_space<vmem>>, %arg3: memref<8x128xf32, #tpu.memory_space<vmem>>) attributes {dimension_semantics = [], scalar_prefetch = 0 : i64, scratch_operands = 0 : i64, tpu.core_type = #tpu.core_type<tc>} {
    %c0 = arith.constant 0 : index
    %c0_0 = arith.constant 0 : index
    %0 = vector.load %arg0[%c0, %c0_0] : memref<8x8xbf16, #tpu.memory_space<vmem>>, vector<8x8xbf16>
    %c0_1 = arith.constant 0 : index
    %c0_2 = arith.constant 0 : index
    %1 = vector.load %arg1[%c0_1, %c0_2] : memref<8x16xbf16, #tpu.memory_space<vmem>>, vector<8x16xbf16>
    %c0_3 = arith.constant 0 : index
    %c0_4 = arith.constant 0 : index
    %2 = vector.load %arg2[%c0_3, %c0_4] : memref<88x128xf32, #tpu.memory_space<vmem>>, vector<16x32xf32>
    %3 = arith.truncf %2 : vector<16x32xf32> to vector<16x32xbf16>
    %c16 = arith.constant 16 : index
    %c0_5 = arith.constant 0 : index
    %4 = vector.load %arg2[%c16, %c0_5] : memref<88x128xf32, #tpu.memory_space<vmem>>, vector<1x32xf32>
    %c17 = arith.constant 17 : index
    %c0_6 = arith.constant 0 : index
    %5 = vector.load %arg2[%c17, %c0_6] : memref<88x128xf32, #tpu.memory_space<vmem>>, vector<32x32xf32>
    %6 = arith.truncf %5 : vector<32x32xf32> to vector<32x32xbf16>
    %c49 = arith.constant 49 : index
    %c0_7 = arith.constant 0 : index
    %7 = vector.load %arg2[%c49, %c0_7] : memref<88x128xf32, #tpu.memory_space<vmem>>, vector<1x32xf32>
    %c50 = arith.constant 50 : index
    %c0_8 = arith.constant 0 : index
    %8 = vector.load %arg2[%c50, %c0_8] : memref<88x128xf32, #tpu.memory_space<vmem>>, vector<32x128xf32>
    %9 = arith.truncf %8 : vector<32x128xf32> to vector<32x128xbf16>
    %c82 = arith.constant 82 : index
    %c0_9 = arith.constant 0 : index
    %10 = vector.load %arg2[%c82, %c0_9] : memref<88x128xf32, #tpu.memory_space<vmem>>, vector<1x128xf32>
    %cst = arith.constant dense<0.000000e+00> : vector<8x16xf32>
    %11 = tpu.matmul %0, %1, %cst {dimension_numbers = #tpu.dot_dimension_numbers<[1], [0], [0], [1], [0, 0, 1, 1], [], []>} : vector<8x8xbf16>, vector<8x16xbf16>, vector<8x16xf32> -> vector<8x16xf32>
    %12 = arith.truncf %11 : vector<8x16xf32> to vector<8x16xbf16>
    %cst_10 = arith.constant dense<0.000000e+00> : vector<8x32xf32>
    %13 = tpu.matmul %12, %3, %cst_10 {dimension_numbers = #tpu.dot_dimension_numbers<[1], [0], [0], [1], [0, 0, 1, 1], [], []>} : vector<8x16xbf16>, vector<16x32xbf16>, vector<8x32xf32> -> vector<8x32xf32>
    %14 = vector.broadcast %4 : vector<1x32xf32> to vector<8x32xf32>
    %15 = arith.addf %13, %14 : vector<8x32xf32>
    %cst_11 = arith.constant 0.000000e+00 : f32
    %16 = vector.broadcast %cst_11 : f32 to vector<8x32xf32>
    %17 = arith.maximumf %15, %16 : vector<8x32xf32>
    %18 = arith.truncf %17 : vector<8x32xf32> to vector<8x32xbf16>
    %cst_12 = arith.constant dense<0.000000e+00> : vector<8x32xf32>
    %19 = tpu.matmul %18, %6, %cst_12 {dimension_numbers = #tpu.dot_dimension_numbers<[1], [0], [0], [1], [0, 0, 1, 1], [], []>} : vector<8x32xbf16>, vector<32x32xbf16>, vector<8x32xf32> -> vector<8x32xf32>
    %20 = arith.truncf %19 : vector<8x32xf32> to vector<8x32xbf16>
    %cst_13 = arith.constant dense<0.000000e+00> : vector<8x32xf32>
    %21 = tpu.matmul %0, %20, %cst_13 {dimension_numbers = #tpu.dot_dimension_numbers<[1], [0], [0], [1], [0, 0, 1, 1], [], []>} : vector<8x8xbf16>, vector<8x32xbf16>, vector<8x32xf32> -> vector<8x32xf32>
    %22 = vector.broadcast %7 : vector<1x32xf32> to vector<8x32xf32>
    %23 = arith.addf %21, %22 : vector<8x32xf32>
    %cst_14 = arith.constant 0.000000e+00 : f32
    %24 = vector.broadcast %cst_14 : f32 to vector<8x32xf32>
    %25 = arith.maximumf %23, %24 : vector<8x32xf32>
    %26 = arith.truncf %25 : vector<8x32xf32> to vector<8x32xbf16>
    %cst_15 = arith.constant dense<0.000000e+00> : vector<8x128xf32>
    %27 = tpu.matmul %26, %9, %cst_15 {dimension_numbers = #tpu.dot_dimension_numbers<[1], [0], [0], [1], [0, 0, 1, 1], [], []>} : vector<8x32xbf16>, vector<32x128xbf16>, vector<8x128xf32> -> vector<8x128xf32>
    %28 = arith.truncf %27 : vector<8x128xf32> to vector<8x128xbf16>
    %cst_16 = arith.constant dense<0.000000e+00> : vector<8x128xf32>
    %29 = tpu.matmul %0, %28, %cst_16 {dimension_numbers = #tpu.dot_dimension_numbers<[1], [0], [0], [1], [0, 0, 1, 1], [], []>} : vector<8x8xbf16>, vector<8x128xbf16>, vector<8x128xf32> -> vector<8x128xf32>
    %30 = vector.broadcast %10 : vector<1x128xf32> to vector<8x128xf32>
    %31 = arith.addf %29, %30 : vector<8x128xf32>
    %cst_17 = arith.constant dense<0xFF800000> : vector<8xf32>
    %32 = vector.multi_reduction <maximumf>, %31, %cst_17 [1] : vector<8x128xf32> to vector<8xf32>
    %33 = vector.shape_cast %32 : vector<8xf32> to vector<8x1xf32>
    %34 = vector.broadcast %33 : vector<8x1xf32> to vector<8x128xf32>
    %35 = arith.subf %31, %34 : vector<8x128xf32>
    %36 = math.exp %35 : vector<8x128xf32>
    %cst_18 = arith.constant dense<0.000000e+00> : vector<8xf32>
    %37 = vector.multi_reduction <add>, %36, %cst_18 [1] : vector<8x128xf32> to vector<8xf32>
    %38 = vector.shape_cast %37 : vector<8xf32> to vector<8x1xf32>
    %39 = math.log %38 : vector<8x1xf32>
    %40 = vector.broadcast %39 : vector<8x1xf32> to vector<8x128xf32>
    %41 = arith.subf %35, %40 : vector<8x128xf32>
    %c0_19 = arith.constant 0 : index
    %c0_20 = arith.constant 0 : index
    %42 = vector.load %arg3[%c0_19, %c0_20] : memref<8x128xf32, #tpu.memory_space<vmem>>, vector<8x128xf32>
    tpu.vector_store %arg3[%c0_19, %c0_20], %41 {strides = array<i32>} : memref<8x128xf32, #tpu.memory_space<vmem>>, vector<8x128xf32>,
    return
  }
}

</mosaic_0001>

<bundles_post_ra>
// kernel: dgl_net_forward_padded.1
= control target key start
LH: loop header
LB: loop body
LE: loop exit
PB: predicated region body
PF: predicated region fallthrough
CT: control target
= control target key end

     0   :  { %8 = vsyncpa [#allocation3], 0  ;;  %s648_s0 = inlined_call_operand.hbm [shape: bf16[8,8], index: 0, kind: input, shape index: {}]   ;;  %s649_s1 = inlined_call_operand.hbm [shape: bf16[8,16], index: 1, kind: input, shape index: {}]   ;;  %s650_s2 = inlined_call_operand.hbm [shape: f32[88,128], index: 2, kind: input, shape index: {}]   ;;  %s651_s3 = inlined_call_operand.hbm [shape: f32[8,128], index: 3, kind: output, shape index: {}]  }
   0x1   :  { %9 = vsyncpa [#allocation6], 0 }
   0x2   :  { %10 = vsyncpa [#allocation4], 0  ;;  %s553_s12 = smov [#allocation5]   ;;  %s554_s14 = smov [#allocation2]  }
   0x3   :  { %s27_s13 = sshll.u32 %s553_s12, 4  ;;  %s17_s15 = sshll.u32 %s554_s14, 4  ;;  %s28_s13 = int_to_ptr.vmem [resolvable:$true] %s27_s13  ;;  %s18_s15 = int_to_ptr.vmem [resolvable:$true] %s17_s15 }
   0x4   :  { %s459_s18 = scalar_lea.hbm %s649_s1, 64 }
   0x5   :  { %p460_p0 = scmp.ne.s32.totalorder %s649_s1, %s459_s18  ;;  %p463_p1 = scmp.lt.u32.totalorder %s459_s18, %s649_s1 }
   0x7   :  { %p465_p2 = pnand %p463_p1, %p460_p0 }
   0x9   :  { %468 = shalt.err (!%p465_p2)
}
   0xa   :  { %s469_s23 = scalar_lea.vmem %s28_s13, 64  ;;  %p474_p4 = scmp.lt.s32.totalorder %s28_s13, %s28_s13 }
   0xb   :  { %p470_p3 = scmp.ne.s32.totalorder %s28_s13, %s469_s23  ;;  %p475_p5 = scmp.lt.s32.totalorder %s469_s23, %s469_s23 }
   0xd   :  { %p476_p6 = por %p475_p5, %p474_p4 }
   0xf   :  { %p477_p7 = pnand %p476_p6, %p470_p3 }
  0x11   :  { %480 = shalt.err (!%p477_p7)
}
  0x12   :  { %30 = dma.hbm_to_vmem [thread:$0]  %s649_s1, 64, %s28_s13, [#allocation6]  }
  0x13   :  { %s481_s28 = scalar_lea.hbm %s648_s0, 64 }
  0x14   :  { %p482_p8 = scmp.ne.s32.totalorder %s648_s0, %s481_s28  ;;  %p485_p9 = scmp.lt.u32.totalorder %s481_s28, %s648_s0 }
  0x16   :  { %p487_p10 = pnand %p485_p9, %p482_p8 }
  0x18   :  { %490 = shalt.err (!%p487_p10)
}
  0x19   :  { %s491_s6 = scalar_lea.vmem %s18_s15, 64  ;;  %p496_p12 = scmp.lt.s32.totalorder %s18_s15, %s18_s15 }
  0x1a   :  { %p492_p11 = scmp.ne.s32.totalorder %s18_s15, %s491_s6  ;;  %p497_p13 = scmp.lt.s32.totalorder %s491_s6, %s491_s6 }
  0x1c   :  { %p498_p0 = por %p497_p13, %p496_p12 }
  0x1e   :  { %p499_p1 = pnand %p498_p0, %p492_p11 }
  0x20   :  { %502 = shalt.err (!%p499_p1)
}
  0x21   :  { %20 = dma.hbm_to_vmem [thread:$0]  %s648_s0, 64, %s18_s15, [#allocation3]  }
  0x22   :  { %s555_s8 = smov [#allocation7]   ;;  %s503_s12 = scalar_lea.hbm %s650_s2, 1408 }
  0x23   :  { %s36_s9 = sshll.u32 %s555_s8, 4  ;;  %p504_p2 = scmp.ne.s32.totalorder %s650_s2, %s503_s12  ;;  %s37_s9 = int_to_ptr.vmem [resolvable:$true] %s36_s9 }
  0x24   :  { %p507_p3 = scmp.lt.u32.totalorder %s503_s12, %s650_s2 }
  0x26   :  { %p509_p4 = pnand %p507_p3, %p504_p2 }
  0x28   :  { %512 = shalt.err (!%p509_p4)
}
  0x29   :  { %s513_s18 = scalar_lea.vmem %s37_s9, 1408  ;;  %p518_p6 = scmp.lt.s32.totalorder %s37_s9, %s37_s9 }
  0x2a   :  { %p514_p5 = scmp.ne.s32.totalorder %s37_s9, %s513_s18  ;;  %p519_p7 = scmp.lt.s32.totalorder %s513_s18, %s513_s18 }
  0x2c   :  { %p520_p8 = por %p519_p7, %p518_p6 }
  0x2e   :  { %p521_p9 = pnand %p520_p8, %p514_p5 }
  0x30   :  { %524 = shalt.err (!%p521_p9)
}
  0x31   :  { %s556_s0 = smov 128   ;;  %s557_s15 = smov 8  }
  0x32   :  { %42 = dma.hbm_to_vmem [thread:$0]  %s650_s2, 1408, %s37_s9, [#allocation6], %s556_s0, %s556_s0, %s557_s15  }
  0x33   :  { %547 = dma.done.wait [#allocation3], 64  }
  0x34   :  { %548 = vsyncadd [#allocation3], 4294967232 }
  0x35   :  { %549 = dma.done.wait [#allocation6], 1472  }
  0x36   :  { %550 = vsyncadd [#allocation6], 4294965824  ;;  %v558_v0 = vmov 0.0   ;;  %vm559_vm0 = vmmov 0   ;;  %vm77_vm1 = vcmask 1043456   ;;  %vm73_vm2 = vcmask 64512  }
  0x37   :  { %407 = vmatprep.subr.bf16.mxu0 %v558_v0  ;;  %409 = vmatprep.mubr.msk.bf16.mxu0 %vm559_vm0, %v558_v0  ;;  %v54_v1 = vld [vmem:[#allocation5] sm:$0xf]  ;;  %v620_v3 = vld [vmem:[#allocation2] sm:$0xf]  ;;  %v55_v4 = vld [vmem:[#allocation7] sm:$0xff]  ;;  %vm126_vm3 = vcmask 130048  }
  0x38   :  { %413 = vmatprep.subr.bf16.mxu1 %v558_v0  ;;  %415 = vmatprep.mubr.msk.bf16.mxu1 %vm559_vm0, %v558_v0  ;;  %v79_v2 = vsel %vm77_vm1, %v54_v1, 0  ;;  %v56_v5 = vld [vmem:[#allocation7 + $0x8] sm:$0xff]  ;;  %v59_v12 = vld [vmem:[#allocation7 + $0x11] sm:$0xff]  ;;  %v60_v13 = vld [vmem:[#allocation7 + $0x19] sm:$0xff]  ;;  %vm172_vm4 = vcmask 261120   ;;  %s560_s2 = smov [#allocation8]  }
  0x39   :  { %408 = vmatpush3.bf16.msra.mxu0 %v79_v2  ;;  %v57_v6 = vpack.c.bf16 %v56_v5, %v55_v4  ;;  %v63_v14 = vpack.c.bf16 %v60_v13, %v59_v12  ;;  %v61_v15 = vld [vmem:[#allocation7 + $0x21] sm:$0xff]  ;;  %v62_v16 = vld [vmem:[#allocation7 + $0x29] sm:$0xff]  ;;  %v66_v32 = vld [vmem:[#allocation7 + $0x32] sm:$0xff]  ;;  %s374_s21 = sshll.u32 %s560_s2, 4  ;;  %s375_s21 = int_to_ptr.vmem [resolvable:$true] %s374_s21 }
  0x3a   :  { %419 = vmatprep.subr.bf16.mxu0 %v558_v0  ;;  %v64_v17 = vpack.c.bf16 %v62_v16, %v61_v15  ;;  %v385_v18 = vld [vmem:[#allocation7 + $0x10] ss:$0 sm:$0xff]  ;;  %v67_v33 = vld [vmem:[#allocation7 + $0x3a] sm:$0xff]  ;;  %v68_v35 = vld [vmem:[#allocation7 + $0x42] sm:$0xff]  ;;  %s525_s22 = scalar_lea.vmem %s375_s21, 128  ;;  %p530_p11 = scmp.lt.s32.totalorder %s375_s21, %s375_s21 }
  0x3b   :  { %414 = vmatpush3.bf16.msra.mxu1 %v57_v6  ;;  %v70_v34 = vpack.c.bf16 %v67_v33, %v66_v32  ;;  %v69_v36 = vld [vmem:[#allocation7 + $0x4a] sm:$0xff]  ;;  %v391_v52 = vld [vmem:[#allocation7 + $0x52] ss:$0 sm:$0xff]  ;;  %p526_p10 = scmp.ne.s32.totalorder %s375_s21, %s525_s22  ;;  %p531_p12 = scmp.lt.s32.totalorder %s525_s22, %s525_s22 }
  0x3c   :  { %410 = vmatmul.mubr.msk.bf16.vlgmr.msra.gmra.mrb[0].mxu0 %vm73_vm2, %v620_v3  ;;  %427 = vmatprep.subr.bf16.mxu1 %v558_v0  ;;  %v71_v37 = vpack.c.bf16 %v69_v36, %v68_v35  ;;  %v388_v38 = vld [vmem:[#allocation7 + $0x31] ss:$0 sm:$0xff] }
  0x3d   :  { %423 = vmatprep.mubr.msk.bf16.mxu0 %vm559_vm0, %v558_v0  ;;  %420 = vmatpush3.bf16.msra.mxu0 %v63_v14  ;;  %p532_p13 = por %p531_p12, %p530_p11 }
  0x3e   :  { %421 = vmatprep.subr.bf16.mxu0 %v558_v0 }
  0x3f   :  { %p533_p0 = pnand %p532_p13, %p526_p10 }
  0x41   :  { %422 = vmatpush3.bf16.msra.mxu0 %v64_v17 }
  0x42   :  { %433 = vmatprep.subr.bf16.mxu0 %v558_v0 }
 0x10f   :  { %v115_v7 = vpop.f32.mrb[0].mxu0 }
 0x110   :  { %v121_v8 = vpack.c.bf16 %v115_v7, %v115_v7  ;;  %v411_v9 = vpop.f32.mrb[1].mxu0 }
 0x111   :  { %v118_v10 = vpop.f32.mrb[2].mxu0 }
 0x112   :  { %v412_v11 = vpop.f32.mrb[3].mxu0  ;;  %416 = vmatmul.mubr.msk.bf16.vlgmr.msra.gmra.mrb[0].mxu1 %vm126_vm3, %v121_v8 }
 0x113   :  { %429 = vmatprep.mubr.msk.bf16.mxu1 %vm559_vm0, %v558_v0 }
 0x1e5   :  { %v164_v19 = vpop.f32.mrb[0].mxu1 }
 0x1e6   :  { %v165_v20 = vadd.f32 %v385_v18, %v164_v19  ;;  %v417_v21 = vpop.f32.mrb[1].mxu1 }
 0x1e7   :  { %v167_v22 = vpop.f32.mrb[2].mxu1 }
 0x1e8   :  { %v170_v23 = vmax.f32 %v165_v20, 0.0  ;;  %v418_v24 = vpop.f32.mrb[3].mxu1 }
 0x1ea   :  { %v171_v25 = vpack.c.bf16 %v170_v23, %v170_v23 }
 0x1ec   :  { %424 = vmatmul.mubr.msk.bf16.vlgmr.msra.gmra.mrb[4].mxu0 %vm172_vm4, %v171_v25 }
 0x1ed   :  { %437 = vmatprep.mubr.msk.bf16.mxu0 %vm559_vm0, %v558_v0  ;;  %434 = vmatpush3.bf16.msra.mxu0 %v70_v34 }
 0x1ee   :  { %435 = vmatprep.subr.bf16.mxu0 %v558_v0 }
 0x1f1   :  { %436 = vmatpush3.bf16.msra.mxu0 %v71_v37 }
 0x2bf   :  { %v210_v26 = vpop.f32.mrb[4].mxu0 }
 0x2c0   :  { %v216_v27 = vpack.c.bf16 %v210_v26, %v210_v26  ;;  %v425_v28 = vpop.f32.mrb[5].mxu0 }
 0x2c1   :  { %v213_v29 = vpop.f32.mrb[6].mxu0 }
 0x2c2   :  { %v222_v30 = vsel %vm77_vm1, %v216_v27, 0  ;;  %v426_v31 = vpop.f32.mrb[7].mxu0 }
 0x2c3   :  { %428 = vmatpush3.bf16.msra.mxu1 %v222_v30 }
 0x2c4   :  { %441 = vmatprep.subr.bf16.mxu1 %v558_v0 }
 0x2c6   :  { %430 = vmatmul.mubr.msk.bf16.vlgmr.msra.gmra.mrb[4].mxu1 %vm73_vm2, %v620_v3 }
 0x2c7   :  { %443 = vmatprep.mubr.msk.bf16.mxu1 %vm559_vm0, %v558_v0 }
 0x399   :  { %v258_v39 = vpop.f32.mrb[4].mxu1 }
 0x39a   :  { %v259_v40 = vadd.f32 %v388_v38, %v258_v39  ;;  %v431_v41 = vpop.f32.mrb[5].mxu1 }
 0x39b   :  { %v261_v42 = vpop.f32.mrb[6].mxu1 }
 0x39c   :  { %v264_v43 = vmax.f32 %v259_v40, 0.0  ;;  %v432_v44 = vpop.f32.mrb[7].mxu1 }
 0x39e   :  { %v265_v45 = vpack.c.bf16 %v264_v43, %v264_v43 }
 0x3a0   :  { %438 = vmatmul.mubr.msk.bf16.vlgmr.msra.gmra.mrb[8].mxu0 %vm172_vm4, %v265_v45 }
 0x473   :  { %v303_v46 = vpop.f32.mrb[8].mxu0 }
 0x474   :  { %v309_v47 = vpack.c.bf16 %v303_v46, %v303_v46  ;;  %v439_v48 = vpop.f32.mrb[9].mxu0 }
 0x475   :  { %v306_v49 = vpop.f32.mrb[10].mxu0 }
 0x476   :  { %v315_v50 = vsel %vm77_vm1, %v309_v47, 0  ;;  %v440_v51 = vpop.f32.mrb[11].mxu0 }
 0x477   :  { %442 = vmatpush3.bf16.msra.mxu1 %v315_v50 }
 0x47a   :  { %444 = vmatmul.mubr.msk.bf16.vlgmr.msra.gmra.mrb[8].mxu1 %vm73_vm2, %v620_v3 }
 0x54d   :  { %v351_v53 = vpop.f32.mrb[8].mxu1 }
 0x54e   :  { %v352_v54 = vadd.f32 %v391_v52, %v351_v53  ;;  %v445_v55 = vpop.f32.mrb[9].mxu1 }
 0x54f   :  { %v354_v56 = vpop.f32.mrb[10].mxu1 }
 0x550   :  { %357 = vmax.xlane.f32.xlu0 %v352_v54  ;;  %v446_v57 = vpop.f32.mrb[11].mxu1 }
 0x5dd   :  { %v358_v58 = vpop.xlane.xlu0 %357 }
 0x5de   :  { %v359_v59 = vsub.f32 %v352_v54, %v358_v58 }
 0x5e0   :  { %v360_v60 = vmul.f32 1.442695, %v359_v59 }
 0x5e2   :  { %455 = vpow2.f32 %v360_v60 }
 0x5ec   :  { %v456_v61 = vpop.eup %455 }
 0x5ed   :  { %362 = vadd.xlane.f32.xlu0 %v456_v61 }
 0x67a   :  { %v363_v62 = vpop.xlane.xlu0 %362 }
 0x67b   :  { %457 = vlog2.f32 %v363_v62 }
 0x685   :  { %v458_v63 = vpop.eup %457 }
 0x686   :  { %v365_v0 = vmul.f32 0.6931472, %v458_v63 }
 0x688   :  { %v366_v1 = vsub.f32 %v359_v59, %v365_v0 }
 0x68a   :  { %367 = vst [vmem:[#allocation8] sm:$0xff] %v366_v1 }
 0x68b   :  { %536 = shalt.err (!%p533_p0)
}
 0x68c   :  { %s537_s25 = scalar_lea.hbm %s651_s3, 128 }
 0x68d   :  { %p538_p1 = scmp.ne.s32.totalorder %s651_s3, %s537_s25  ;;  %p541_p2 = scmp.lt.u32.totalorder %s537_s25, %s651_s3 }
 0x68f   :  { %p543_p3 = pnand %p541_p2, %p538_p1 }
 0x691   :  { %546 = shalt.err (!%p543_p3)
}
 0x692   :  { %377 = dma.vmem_to_hbm [thread:$0]  %s375_s21, 128, %s651_s3, [#allocation4]  }
 0x693   :  { %551 = dma.done.wait [#allocation4], 128  }
 0x694   :  { %552 = vsyncadd [#allocation4], 4294967168 }
 0x695   :  { %381 = vsyncpa [#allocation3], 1 }
 0x696   :  { %382 = vsyncpa [#allocation6], 1 }
 0x697   :  { %383 = vsyncpa [#allocation4], 1 }

</bundles_post_ra>
